<compile_context>
chip_gen: v7x
topology: tpu7x:2x2x1
jax: 0.10.0
libtpu: 0.0.40
codegen_flags: <defaults>
</compile_context>

<pallas_src>
import jax
import jax.numpy as jnp
import numpy as np
from jax.experimental import pallas as pl
from jax.experimental.pallas import tpu as pltpu

GROUPS = 32
EPS = 1e-5

# 4-phase decomposition of (nearest x2 upsample -> 3x3 conv, pad=1):
# output pixel (2i+pi, 2j+pj) only sees a 2x2 window of the ORIGINAL image.
#   pi == 0: original rows (i-1, i), 3x3-kernel rows merged as ({0}, {1,2})
#   pi == 1: original rows (i, i+1), 3x3-kernel rows merged as ({0,1}, {2})
# (identically for columns / pj).
_MERGE = {0: ((0,), (1, 2)), 1: ((0, 1), (2,))}


def _phase_weights(w_oihw):
    """(Cout, Cin, 3, 3) -> (4, Cout, 4*Cin) effective 2x2 weights per output phase.
    Contraction index k = (a*2 + b)*Cin + cin for tap offset (a, b) of the 2x2 window."""
    cout, cin = w_oihw.shape[0], w_oihw.shape[1]
    phases = []
    for pi in range(2):
        for pj in range(2):
            taps = []
            for a in range(2):
                for b in range(2):
                    acc = jnp.zeros((cout, cin), w_oihw.dtype)
                    for dh in _MERGE[pi][a]:
                        for dw in _MERGE[pj][b]:
                            acc = acc + w_oihw[:, :, dh, dw]
                    taps.append(acc)                              # (Cout, Cin)
            phases.append(jnp.stack(taps, axis=1).reshape(cout, 4 * cin))
    return jnp.stack(phases, axis=0)                              # (4, Cout, 4*Cin)


def _phase_taps(x_nchw):
    """(N, Cin, H, W) -> (N, 4, 4*Cin, H*W): the 2x2 input window per phase,
    with the contraction dim (tap, cin) on sublanes and H*W on lanes."""
    n, cin, h, w = x_nchw.shape
    xp = jnp.pad(x_nchw, ((0, 0), (0, 0), (1, 1), (1, 1)))
    phases = []
    for pi in range(2):
        for pj in range(2):
            taps = [xp[:, :, pi + a:pi + a + h, pj + b:pj + b + w].reshape(n, cin, h * w)
                    for a in range(2) for b in range(2)]
            phases.append(jnp.concatenate(taps, axis=1))          # (N, 4*Cin, HW)
    return jnp.stack(phases, axis=1)                              # (N, 4, 4*Cin, HW)


def _pick_tile_hw(hw, cin):
    """Largest lane-dense HW tile that keeps the double-buffered bf16 taps block small
    (well under v7x's 64 MiB VMEM even at realistic UNet channel counts)."""
    budget_elems = (8 * 1024 * 1024) // (16 * cin * 2)            # ~8 MiB per taps buffer
    for cand in (2048, 1024, 512, 256, 128):
        if cand <= budget_elems and hw % cand == 0:
            return cand
    return hw                                                     # full-dim block fallback


def _make_conv_stats_kernel(cout):
    def kernel(taps_ref, w_ref, b_ref, y_ref, stats_ref):
        t = pl.program_id(1)
        bias = b_ref[...]                                         # (Cout, 1) f32, hoisted
        s1 = jnp.zeros((cout, 1), jnp.float32)
        s2 = jnp.zeros((cout, 1), jnp.float32)
        # 4 independent phase matmuls (2x2 convs), each a single fused-K MXU dot.
        for p in range(4):
            acc = jnp.dot(w_ref[p], taps_ref[0, p],
                          preferred_element_type=jnp.float32)     # (Cout, tile_hw) f32
            acc = acc + bias
            y_ref[0, p] = acc.astype(y_ref.dtype)                 # lane-dense store
            s1 = s1 + jnp.sum(acc, axis=1, keepdims=True)         # per-channel partial sums
            s2 = s2 + jnp.sum(acc * acc, axis=1, keepdims=True)
        partial = jnp.concatenate([s1, s2], axis=1)               # (Cout, 2)

        # Accumulate full-sample statistics across HW tiles (block resident in VMEM
        # across the 'arbitrary' tile axis).
        @pl.when(t == 0)
        def _():
            stats_ref[0] = partial

        @pl.when(t > 0)
        def _():
            stats_ref[0] = stats_ref[0] + partial

    return kernel


def _norm_relu_kernel(y_ref, scale_ref, shift_ref, o_ref):
    y = y_ref[0].astype(jnp.float32)                              # (4, Cout, tile_hw)
    s = scale_ref[0][None, :, :]                                  # (1, Cout, 1), hoisted
    b = shift_ref[0][None, :, :]
    o_ref[0] = jnp.maximum(y * s + b, 0.0)


def up_conv_forward(x_nchw, w_oihw, bias, gamma, beta, *, compute_dtype=jnp.bfloat16):
    """Forward of up_conv. x: (N, Cin, H, W) f32 -> (N, Cout, 2H, 2W) f32."""
    n, cin, h, w = x_nchw.shape
    cout = w_oihw.shape[0]
    assert cout % GROUPS == 0, "GroupNorm(32) requires out_ch % 32 == 0"
    cg = cout // GROUPS
    hw = h * w
    tile_hw = _pick_tile_hw(hw, cin)
    num_tiles = hw // tile_hw

    taps = _phase_taps(x_nchw.astype(compute_dtype))              # (N, 4, 4*Cin, HW)
    wph = _phase_weights(w_oihw.astype(jnp.float32)).astype(compute_dtype)  # (4, Cout, 4*Cin)
    b2 = bias.astype(jnp.float32).reshape(cout, 1)

    vmem_limit = 32 * 1024 * 1024  # explicit scoped-VMEM cap; tiles sized well below it

    # ---- pass 1: 4-phase 2x2 conv + per-channel sum / sum-of-squares accumulation ----
    y, stats = pl.pallas_call(
        _make_conv_stats_kernel(cout),
        out_shape=(jax.ShapeDtypeStruct((n, 4, cout, hw), compute_dtype),
                   jax.ShapeDtypeStruct((n, cout, 2), jnp.float32)),
        grid_spec=pltpu.PrefetchScalarGridSpec(
            num_scalar_prefetch=0,
            grid=(n, num_tiles),
            in_specs=[
                pl.BlockSpec((1, 4, 4 * cin, tile_hw), lambda i, t: (i, 0, 0, t)),
                pl.BlockSpec((4, cout, 4 * cin), lambda i, t: (0, 0, 0)),
                pl.BlockSpec((cout, 1), lambda i, t: (0, 0)),
            ],
            out_specs=[
                pl.BlockSpec((1, 4, cout, tile_hw), lambda i, t: (i, 0, 0, t)),
                pl.BlockSpec((1, cout, 2), lambda i, t: (i, 0, 0)),
            ],
        ),
        compiler_params=pltpu.CompilerParams(
            dimension_semantics=("parallel", "arbitrary"),
            vmem_limit_bytes=vmem_limit,
        ),
    )(taps, wph, b2)

    # ---- tiny per-(sample, group) stats -> per-channel affine (plain JAX, O(N*Cout)) ----
    cnt = 4.0 * hw * cg                                           # == (2H * 2W) * Cg
    ch_sum = stats[..., 0]                                        # (N, Cout)
    ch_sq = stats[..., 1]
    g_mean = ch_sum.reshape(n, GROUPS, cg).sum(-1) / cnt          # (N, G)
    g_var = ch_sq.reshape(n, GROUPS, cg).sum(-1) / cnt - g_mean * g_mean
    g_inv = jax.lax.rsqrt(g_var + EPS)
    mean_c = jnp.repeat(g_mean, cg, axis=1)                       # (N, Cout)
    inv_c = jnp.repeat(g_inv, cg, axis=1)
    gamma_f = gamma.astype(jnp.float32)[None, :]
    beta_f = beta.astype(jnp.float32)[None, :]
    scale = (gamma_f * inv_c).reshape(n, cout, 1)
    shift = (beta_f - mean_c * gamma_f * inv_c).reshape(n, cout, 1)

    # ---- pass 2: lane-dense normalize + ReLU ----
    out_flat = pl.pallas_call(
        _norm_relu_kernel,
        out_shape=jax.ShapeDtypeStruct((n, 4, cout, hw), jnp.float32),
        grid_spec=pltpu.PrefetchScalarGridSpec(
            num_scalar_prefetch=0,
            grid=(n, num_tiles),
            in_specs=[
                pl.BlockSpec((1, 4, cout, tile_hw), lambda i, t: (i, 0, 0, t)),
                pl.BlockSpec((1, cout, 1), lambda i, t: (i, 0, 0)),
                pl.BlockSpec((1, cout, 1), lambda i, t: (i, 0, 0)),
            ],
            out_specs=pl.BlockSpec((1, 4, cout, tile_hw), lambda i, t: (i, 0, 0, t)),
        ),
        compiler_params=pltpu.CompilerParams(
            dimension_semantics=("parallel", "parallel"),
            vmem_limit_bytes=vmem_limit,
        ),
    )(y, scale, shift)

    # ---- de-interleave the 4 output phases back to NCHW (stride-2 lane scatter is not
    #      expressible in a BlockSpec, so this index-only shuffle stays in XLA glue) ----
    out = out_flat.reshape(n, 2, 2, cout, h, w)
    out = jnp.transpose(out, (0, 3, 4, 1, 5, 2))                  # (N, Cout, H, 2, W, 2)
    return out.reshape(n, cout, 2 * h, 2 * w)


def _reference_forward(x, w, b, gamma, beta):
    """Pure-JAX f32 reference (matches PyTorch up_conv semantics), NCHW."""
    xu = jnp.repeat(jnp.repeat(x, 2, axis=2), 2, axis=3)
    y = jax.lax.conv_general_dilated(
        xu, w, window_strides=(1, 1), padding=((1, 1), (1, 1)),
        dimension_numbers=("NCHW", "OIHW", "NCHW"))
    y = y + b.reshape(1, -1, 1, 1)
    N, C, H, W = y.shape
    yg = y.reshape(N, GROUPS, C // GROUPS, H, W)
    mean = jnp.mean(yg, axis=(2, 3, 4), keepdims=True)
    var = jnp.mean((yg - mean) ** 2, axis=(2, 3, 4), keepdims=True)
    yn = ((yg - mean) / jnp.sqrt(var + EPS)).reshape(N, C, H, W)
    out = yn * gamma.reshape(1, -1, 1, 1) + beta.reshape(1, -1, 1, 1)
    return jnp.maximum(out, 0.0)


if __name__ == "__main__":
    # Small shapes consistent with the module (out_ch must be divisible by groups=32).
    N, Cin, H, W = 2, 4, 16, 16
    Cout = 32

    key = jax.random.PRNGKey(0)
    kx, kw, kb, kg, kbeta = jax.random.split(key, 5)
    x = jax.random.normal(kx, (N, Cin, H, W), jnp.float32)
    w = jax.random.normal(kw, (Cout, Cin, 3, 3), jnp.float32) * 0.1
    b = jax.random.normal(kb, (Cout,), jnp.float32) * 0.1
    gamma = 1.0 + 0.1 * jax.random.normal(kg, (Cout,), jnp.float32)
    beta = 0.1 * jax.random.normal(kbeta, (Cout,), jnp.float32)

    fwd = jax.jit(up_conv_forward)
    out = jax.block_until_ready(fwd(x, w, b, gamma, beta))
    ref = jax.block_until_ready(_reference_forward(x, w, b, gamma, beta))

    # bf16 MXU inputs with f32 accumulation (per the perf guidance) -> bf16-class tolerance
    # against the f32 reference.
    np.testing.assert_allclose(np.asarray(out), np.asarray(ref), rtol=5e-2, atol=5e-2)
    print("KERNEL_OK")
</pallas_src>

<mosaic_0001>
module attributes {stable_mosaic.version = 11 : i64} {
  func.func @_norm_relu_kernel(%arg0: i32, %arg1: i32, %arg2: memref<1x4x32x256xbf16, #tpu.memory_space<vmem>>, %arg3: memref<1x32x1xf32, #tpu.memory_space<vmem>>, %arg4: memref<1x32x1xf32, #tpu.memory_space<vmem>>, %arg5: memref<1x4x32x256xf32, #tpu.memory_space<vmem>>) attributes {dimension_semantics = [#tpu.dimension_semantics<parallel>, #tpu.dimension_semantics<parallel>], iteration_bounds = array<i64: 2, 1>, scalar_prefetch = 0 : i64, scratch_operands = 0 : i64, tpu.core_type = #tpu.core_type<tc>, window_params = [{transform_indices = @transform_0, window_bounds = array<i64: 1, 4, 32, 256>}, {transform_indices = @transform_1, window_bounds = array<i64: 1, 32, 1>}, {transform_indices = @transform_2, window_bounds = array<i64: 1, 32, 1>}, {transform_indices = @transform_3, window_bounds = array<i64: 1, 4, 32, 256>}]} {
    %c0 = arith.constant 0 : index
    %c0_0 = arith.constant 0 : index
    %c0_1 = arith.constant 0 : index
    %c0_2 = arith.constant 0 : index
    %0 = vector.load %arg2[%c0, %c0_0, %c0_1, %c0_2] : memref<1x4x32x256xbf16, #tpu.memory_space<vmem>>, vector<1x4x32x256xbf16>
    %1 = vector.shape_cast %0 : vector<1x4x32x256xbf16> to vector<4x32x256xbf16>
    %2 = arith.extf %1 : vector<4x32x256xbf16> to vector<4x32x256xf32>
    %c0_3 = arith.constant 0 : index
    %c0_4 = arith.constant 0 : index
    %c0_5 = arith.constant 0 : index
    %3 = vector.load %arg3[%c0_3, %c0_4, %c0_5] : memref<1x32x1xf32, #tpu.memory_space<vmem>>, vector<1x32x1xf32>
    %4 = vector.shape_cast %3 : vector<1x32x1xf32> to vector<32x1xf32>
    %5 = vector.shape_cast %4 : vector<32x1xf32> to vector<1x32x1xf32>
    %c0_6 = arith.constant 0 : index
    %c0_7 = arith.constant 0 : index
    %c0_8 = arith.constant 0 : index
    %6 = vector.load %arg4[%c0_6, %c0_7, %c0_8] : memref<1x32x1xf32, #tpu.memory_space<vmem>>, vector<1x32x1xf32>
    %7 = vector.shape_cast %6 : vector<1x32x1xf32> to vector<32x1xf32>
    %8 = vector.shape_cast %7 : vector<32x1xf32> to vector<1x32x1xf32>
    %9 = vector.broadcast %5 : vector<1x32x1xf32> to vector<4x32x256xf32>
    %10 = arith.mulf %2, %9 : vector<4x32x256xf32>
    %11 = vector.broadcast %8 : vector<1x32x1xf32> to vector<4x32x256xf32>
    %12 = arith.addf %10, %11 : vector<4x32x256xf32>
    %cst = arith.constant 0.000000e+00 : f32
    %13 = vector.broadcast %cst : f32 to vector<4x32x256xf32>
    %14 = arith.maximumf %12, %13 : vector<4x32x256xf32>
    %c0_9 = arith.constant 0 : index
    %c0_10 = arith.constant 0 : index
    %c0_11 = arith.constant 0 : index
    %c0_12 = arith.constant 0 : index
    %15 = vector.load %arg5[%c0_9, %c0_10, %c0_11, %c0_12] : memref<1x4x32x256xf32, #tpu.memory_space<vmem>>, vector<1x4x32x256xf32>
    %16 = vector.shape_cast %15 : vector<1x4x32x256xf32> to vector<4x32x256xf32>
    %17 = vector.shape_cast %14 : vector<4x32x256xf32> to vector<1x4x32x256xf32>
    tpu.vector_store %arg5[%c0_9, %c0_10, %c0_11, %c0_12], %17 {strides = array<i32>} : memref<1x4x32x256xf32, #tpu.memory_space<vmem>>, vector<1x4x32x256xf32>,
    return
  }
  func.func @transform_0(%arg0: i32, %arg1: i32) -> (i32, i32, i32, i32) {
    %c0_i32 = arith.constant 0 : i32
    %c0_i32_0 = arith.constant 0 : i32
    %c0_i32_1 = arith.constant 0 : i32
    return %arg0, %c0_i32, %c0_i32_0, %arg1 : i32, i32, i32, i32
  }
  func.func @transform_1(%arg0: i32, %arg1: i32) -> (i32, i32, i32) {
    %c0_i32 = arith.constant 0 : i32
    %c0_i32_0 = arith.constant 0 : i32
    %c0_i32_1 = arith.constant 0 : i32
    return %arg0, %c0_i32, %c0_i32_0 : i32, i32, i32
  }
  func.func @transform_2(%arg0: i32, %arg1: i32) -> (i32, i32, i32) {
    %c0_i32 = arith.constant 0 : i32
    %c0_i32_0 = arith.constant 0 : i32
    %c0_i32_1 = arith.constant 0 : i32
    return %arg0, %c0_i32, %c0_i32_0 : i32, i32, i32
  }
  func.func @transform_3(%arg0: i32, %arg1: i32) -> (i32, i32, i32, i32) {
    %c0_i32 = arith.constant 0 : i32
    %c0_i32_0 = arith.constant 0 : i32
    %c0_i32_1 = arith.constant 0 : i32
    return %arg0, %c0_i32, %c0_i32_0, %arg1 : i32, i32, i32, i32
  }
}

module attributes {stable_mosaic.version = 11 : i64} {
  func.func @kernel(%arg0: i32, %arg1: i32, %arg2: memref<1x4x16x256xbf16, #tpu.memory_space<vmem>>, %arg3: memref<4x32x16xbf16, #tpu.memory_space<vmem>>, %arg4: memref<32x1xf32, #tpu.memory_space<vmem>>, %arg5: memref<1x4x32x256xbf16, #tpu.memory_space<vmem>>, %arg6: memref<1x32x2xf32, #tpu.memory_space<vmem>>) attributes {dimension_semantics = [#tpu.dimension_semantics<parallel>, #tpu.dimension_semantics<arbitrary>], iteration_bounds = array<i64: 2, 1>, scalar_prefetch = 0 : i64, scratch_operands = 0 : i64, tpu.core_type = #tpu.core_type<tc>, window_params = [{transform_indices = @transform_0, window_bounds = array<i64: 1, 4, 16, 256>}, {pipeline_mode = #tpu.pipeline_mode<synchronous>, transform_indices = @transform_1, window_bounds = array<i64: 4, 32, 16>}, {pipeline_mode = #tpu.pipeline_mode<synchronous>, transform_indices = @transform_2, window_bounds = array<i64: 32, 1>}, {transform_indices = @transform_3, window_bounds = array<i64: 1, 4, 32, 256>}, {transform_indices = @transform_4, window_bounds = array<i64: 1, 32, 2>}]} {
    %c0 = arith.constant 0 : index
    %c0_0 = arith.constant 0 : index
    %0 = vector.load %arg4[%c0, %c0_0] : memref<32x1xf32, #tpu.memory_space<vmem>>, vector<32x1xf32>
    %cst = arith.constant 0.000000e+00 : f32
    %1 = vector.broadcast %cst : f32 to vector<32x1xf32>
    %cst_1 = arith.constant 0.000000e+00 : f32
    %2 = vector.broadcast %cst_1 : f32 to vector<32x1xf32>
    %c0_2 = arith.constant 0 : index
    %c0_3 = arith.constant 0 : index
    %c0_4 = arith.constant 0 : index
    %3 = vector.load %arg3[%c0_2, %c0_3, %c0_4] : memref<4x32x16xbf16, #tpu.memory_space<vmem>>, vector<1x32x16xbf16>
    %4 = vector.shape_cast %3 : vector<1x32x16xbf16> to vector<32x16xbf16>
    %c0_5 = arith.constant 0 : index
    %c0_6 = arith.constant 0 : index
    %c0_7 = arith.constant 0 : index
    %c0_8 = arith.constant 0 : index
    %5 = vector.load %arg2[%c0_5, %c0_6, %c0_7, %c0_8] : memref<1x4x16x256xbf16, #tpu.memory_space<vmem>>, vector<1x1x16x256xbf16>
    %6 = vector.shape_cast %5 : vector<1x1x16x256xbf16> to vector<16x256xbf16>
    %cst_9 = arith.constant dense<0.000000e+00> : vector<32x256xf32>
    %7 = tpu.matmul %4, %6, %cst_9 {dimension_numbers = #tpu.dot_dimension_numbers<[1], [0], [0], [1], [0, 0, 1, 1], [], []>} : vector<32x16xbf16>, vector<16x256xbf16>, vector<32x256xf32> -> vector<32x256xf32>
    %8 = vector.broadcast %0 : vector<32x1xf32> to vector<32x256xf32>
    %9 = arith.addf %7, %8 : vector<32x256xf32>
    %10 = arith.truncf %9 : vector<32x256xf32> to vector<32x256xbf16>
    %c0_10 = arith.constant 0 : index
    %c0_11 = arith.constant 0 : index
    %c0_12 = arith.constant 0 : index
    %c0_13 = arith.constant 0 : index
    %11 = vector.load %arg5[%c0_10, %c0_11, %c0_12, %c0_13] : memref<1x4x32x256xbf16, #tpu.memory_space<vmem>>, vector<1x1x32x256xbf16>
    %12 = vector.shape_cast %11 : vector<1x1x32x256xbf16> to vector<32x256xbf16>
    %13 = vector.shape_cast %10 : vector<32x256xbf16> to vector<1x1x32x256xbf16>
    tpu.vector_store %arg5[%c0_10, %c0_11, %c0_12, %c0_13], %13 {strides = array<i32>} : memref<1x4x32x256xbf16, #tpu.memory_space<vmem>>, vector<1x1x32x256xbf16>,
    %cst_14 = arith.constant dense<0.000000e+00> : vector<32xf32>
    %14 = vector.multi_reduction <add>, %9, %cst_14 [1] : vector<32x256xf32> to vector<32xf32>
    %15 = vector.shape_cast %14 : vector<32xf32> to vector<32x1xf32>
    %16 = arith.addf %1, %15 : vector<32x1xf32>
    %17 = arith.mulf %9, %9 : vector<32x256xf32>
    %cst_15 = arith.constant dense<0.000000e+00> : vector<32xf32>
    %18 = vector.multi_reduction <add>, %17, %cst_15 [1] : vector<32x256xf32> to vector<32xf32>
    %19 = vector.shape_cast %18 : vector<32xf32> to vector<32x1xf32>
    %20 = arith.addf %2, %19 : vector<32x1xf32>
    %c1 = arith.constant 1 : index
    %c0_16 = arith.constant 0 : index
    %c0_17 = arith.constant 0 : index
    %21 = vector.load %arg3[%c1, %c0_16, %c0_17] : memref<4x32x16xbf16, #tpu.memory_space<vmem>>, vector<1x32x16xbf16>
    %22 = vector.shape_cast %21 : vector<1x32x16xbf16> to vector<32x16xbf16>
    %c0_18 = arith.constant 0 : index
    %c1_19 = arith.constant 1 : index
    %c0_20 = arith.constant 0 : index
    %c0_21 = arith.constant 0 : index
    %23 = vector.load %arg2[%c0_18, %c1_19, %c0_20, %c0_21] : memref<1x4x16x256xbf16, #tpu.memory_space<vmem>>, vector<1x1x16x256xbf16>
    %24 = vector.shape_cast %23 : vector<1x1x16x256xbf16> to vector<16x256xbf16>
    %cst_22 = arith.constant dense<0.000000e+00> : vector<32x256xf32>
    %25 = tpu.matmul %22, %24, %cst_22 {dimension_numbers = #tpu.dot_dimension_numbers<[1], [0], [0], [1], [0, 0, 1, 1], [], []>} : vector<32x16xbf16>, vector<16x256xbf16>, vector<32x256xf32> -> vector<32x256xf32>
    %26 = vector.broadcast %0 : vector<32x1xf32> to vector<32x256xf32>
    %27 = arith.addf %25, %26 : vector<32x256xf32>
    %28 = arith.truncf %27 : vector<32x256xf32> to vector<32x256xbf16>
    %c0_23 = arith.constant 0 : index
    %c1_24 = arith.constant 1 : index
    %c0_25 = arith.constant 0 : index
    %c0_26 = arith.constant 0 : index
    %29 = vector.load %arg5[%c0_23, %c1_24, %c0_25, %c0_26] : memref<1x4x32x256xbf16, #tpu.memory_space<vmem>>, vector<1x1x32x256xbf16>
    %30 = vector.shape_cast %29 : vector<1x1x32x256xbf16> to vector<32x256xbf16>
    %31 = vector.shape_cast %28 : vector<32x256xbf16> to vector<1x1x32x256xbf16>
    tpu.vector_store %arg5[%c0_23, %c1_24, %c0_25, %c0_26], %31 {strides = array<i32>} : memref<1x4x32x256xbf16, #tpu.memory_space<vmem>>, vector<1x1x32x256xbf16>,
    %cst_27 = arith.constant dense<0.000000e+00> : vector<32xf32>
    %32 = vector.multi_reduction <add>, %27, %cst_27 [1] : vector<32x256xf32> to vector<32xf32>
    %33 = vector.shape_cast %32 : vector<32xf32> to vector<32x1xf32>
    %34 = arith.addf %16, %33 : vector<32x1xf32>
    %35 = arith.mulf %27, %27 : vector<32x256xf32>
    %cst_28 = arith.constant dense<0.000000e+00> : vector<32xf32>
    %36 = vector.multi_reduction <add>, %35, %cst_28 [1] : vector<32x256xf32> to vector<32xf32>
    %37 = vector.shape_cast %36 : vector<32xf32> to vector<32x1xf32>
    %38 = arith.addf %20, %37 : vector<32x1xf32>
    %c2 = arith.constant 2 : index
    %c0_29 = arith.constant 0 : index
    %c0_30 = arith.constant 0 : index
    %39 = vector.load %arg3[%c2, %c0_29, %c0_30] : memref<4x32x16xbf16, #tpu.memory_space<vmem>>, vector<1x32x16xbf16>
    %40 = vector.shape_cast %39 : vector<1x32x16xbf16> to vector<32x16xbf16>
    %c0_31 = arith.constant 0 : index
    %c2_32 = arith.constant 2 : index
    %c0_33 = arith.constant 0 : index
    %c0_34 = arith.constant 0 : index
    %41 = vector.load %arg2[%c0_31, %c2_32, %c0_33, %c0_34] : memref<1x4x16x256xbf16, #tpu.memory_space<vmem>>, vector<1x1x16x256xbf16>
    %42 = vector.shape_cast %41 : vector<1x1x16x256xbf16> to vector<16x256xbf16>
    %cst_35 = arith.constant dense<0.000000e+00> : vector<32x256xf32>
    %43 = tpu.matmul %40, %42, %cst_35 {dimension_numbers = #tpu.dot_dimension_numbers<[1], [0], [0], [1], [0, 0, 1, 1], [], []>} : vector<32x16xbf16>, vector<16x256xbf16>, vector<32x256xf32> -> vector<32x256xf32>
    %44 = vector.broadcast %0 : vector<32x1xf32> to vector<32x256xf32>
    %45 = arith.addf %43, %44 : vector<32x256xf32>
    %46 = arith.truncf %45 : vector<32x256xf32> to vector<32x256xbf16>
    %c0_36 = arith.constant 0 : index
    %c2_37 = arith.constant 2 : index
    %c0_38 = arith.constant 0 : index
    %c0_39 = arith.constant 0 : index
    %47 = vector.load %arg5[%c0_36, %c2_37, %c0_38, %c0_39] : memref<1x4x32x256xbf16, #tpu.memory_space<vmem>>, vector<1x1x32x256xbf16>
    %48 = vector.shape_cast %47 : vector<1x1x32x256xbf16> to vector<32x256xbf16>
    %49 = vector.shape_cast %46 : vector<32x256xbf16> to vector<1x1x32x256xbf16>
    tpu.vector_store %arg5[%c0_36, %c2_37, %c0_38, %c0_39], %49 {strides = array<i32>} : memref<1x4x32x256xbf16, #tpu.memory_space<vmem>>, vector<1x1x32x256xbf16>,
    %cst_40 = arith.constant dense<0.000000e+00> : vector<32xf32>
    %50 = vector.multi_reduction <add>, %45, %cst_40 [1] : vector<32x256xf32> to vector<32xf32>
    %51 = vector.shape_cast %50 : vector<32xf32> to vector<32x1xf32>
    %52 = arith.addf %34, %51 : vector<32x1xf32>
    %53 = arith.mulf %45, %45 : vector<32x256xf32>
    %cst_41 = arith.constant dense<0.000000e+00> : vector<32xf32>
    %54 = vector.multi_reduction <add>, %53, %cst_41 [1] : vector<32x256xf32> to vector<32xf32>
    %55 = vector.shape_cast %54 : vector<32xf32> to vector<32x1xf32>
    %56 = arith.addf %38, %55 : vector<32x1xf32>
    %c3 = arith.constant 3 : index
    %c0_42 = arith.constant 0 : index
    %c0_43 = arith.constant 0 : index
    %57 = vector.load %arg3[%c3, %c0_42, %c0_43] : memref<4x32x16xbf16, #tpu.memory_space<vmem>>, vector<1x32x16xbf16>
    %58 = vector.shape_cast %57 : vector<1x32x16xbf16> to vector<32x16xbf16>
    %c0_44 = arith.constant 0 : index
    %c3_45 = arith.constant 3 : index
    %c0_46 = arith.constant 0 : index
    %c0_47 = arith.constant 0 : index
    %59 = vector.load %arg2[%c0_44, %c3_45, %c0_46, %c0_47] : memref<1x4x16x256xbf16, #tpu.memory_space<vmem>>, vector<1x1x16x256xbf16>
    %60 = vector.shape_cast %59 : vector<1x1x16x256xbf16> to vector<16x256xbf16>
    %cst_48 = arith.constant dense<0.000000e+00> : vector<32x256xf32>
    %61 = tpu.matmul %58, %60, %cst_48 {dimension_numbers = #tpu.dot_dimension_numbers<[1], [0], [0], [1], [0, 0, 1, 1], [], []>} : vector<32x16xbf16>, vector<16x256xbf16>, vector<32x256xf32> -> vector<32x256xf32>
    %62 = vector.broadcast %0 : vector<32x1xf32> to vector<32x256xf32>
    %63 = arith.addf %61, %62 : vector<32x256xf32>
    %64 = arith.truncf %63 : vector<32x256xf32> to vector<32x256xbf16>
    %c0_49 = arith.constant 0 : index
    %c3_50 = arith.constant 3 : index
    %c0_51 = arith.constant 0 : index
    %c0_52 = arith.constant 0 : index
    %65 = vector.load %arg5[%c0_49, %c3_50, %c0_51, %c0_52] : memref<1x4x32x256xbf16, #tpu.memory_space<vmem>>, vector<1x1x32x256xbf16>
    %66 = vector.shape_cast %65 : vector<1x1x32x256xbf16> to vector<32x256xbf16>
    %67 = vector.shape_cast %64 : vector<32x256xbf16> to vector<1x1x32x256xbf16>
    tpu.vector_store %arg5[%c0_49, %c3_50, %c0_51, %c0_52], %67 {strides = array<i32>} : memref<1x4x32x256xbf16, #tpu.memory_space<vmem>>, vector<1x1x32x256xbf16>,
    %cst_53 = arith.constant dense<0.000000e+00> : vector<32xf32>
    %68 = vector.multi_reduction <add>, %63, %cst_53 [1] : vector<32x256xf32> to vector<32xf32>
    %69 = vector.shape_cast %68 : vector<32xf32> to vector<32x1xf32>
    %70 = arith.addf %52, %69 : vector<32x1xf32>
    %71 = arith.mulf %63, %63 : vector<32x256xf32>
    %cst_54 = arith.constant dense<0.000000e+00> : vector<32xf32>
    %72 = vector.multi_reduction <add>, %71, %cst_54 [1] : vector<32x256xf32> to vector<32xf32>
    %73 = vector.shape_cast %72 : vector<32xf32> to vector<32x1xf32>
    %74 = arith.addf %56, %73 : vector<32x1xf32>
    %75 = tpu.concatenate %70, %74 in 1 : vector<32x1xf32>, vector<32x1xf32> -> vector<32x2xf32>
    %c0_i32 = arith.constant 0 : i32
    %76 = arith.cmpi eq, %arg1, %c0_i32 : i32
    %77 = arith.extui %76 : i1 to i32
    %c0_i32_55 = arith.constant 0 : i32
    %78 = arith.cmpi ne, %77, %c0_i32_55 : i32
    scf.if %78 {
      %c0_58 = arith.constant 0 : index
      %c0_59 = arith.constant 0 : index
      %c0_60 = arith.constant 0 : index
      %82 = vector.load %arg6[%c0_58, %c0_59, %c0_60] : memref<1x32x2xf32, #tpu.memory_space<vmem>>, vector<1x32x2xf32>
      %83 = vector.shape_cast %82 : vector<1x32x2xf32> to vector<32x2xf32>
      %84 = vector.shape_cast %75 : vector<32x2xf32> to vector<1x32x2xf32>
      tpu.vector_store %arg6[%c0_58, %c0_59, %c0_60], %84 {strides = array<i32>} : memref<1x32x2xf32, #tpu.memory_space<vmem>>, vector<1x32x2xf32>,
    } else {
    }
    %c0_i32_56 = arith.constant 0 : i32
    %79 = arith.cmpi sgt, %arg1, %c0_i32_56 : i32
    %80 = arith.extui %79 : i1 to i32
    %c0_i32_57 = arith.constant 0 : i32
    %81 = arith.cmpi ne, %80, %c0_i32_57 : i32
    scf.if %81 {
      %c0_58 = arith.constant 0 : index
      %c0_59 = arith.constant 0 : index
      %c0_60 = arith.constant 0 : index
      %82 = vector.load %arg6[%c0_58, %c0_59, %c0_60] : memref<1x32x2xf32, #tpu.memory_space<vmem>>, vector<1x32x2xf32>
      %83 = vector.shape_cast %82 : vector<1x32x2xf32> to vector<32x2xf32>
      %84 = arith.addf %83, %75 : vector<32x2xf32>
      %c0_61 = arith.constant 0 : index
      %c0_62 = arith.constant 0 : index
      %c0_63 = arith.constant 0 : index
      %85 = vector.load %arg6[%c0_61, %c0_62, %c0_63] : memref<1x32x2xf32, #tpu.memory_space<vmem>>, vector<1x32x2xf32>
      %86 = vector.shape_cast %85 : vector<1x32x2xf32> to vector<32x2xf32>
      %87 = vector.shape_cast %84 : vector<32x2xf32> to vector<1x32x2xf32>
      tpu.vector_store %arg6[%c0_61, %c0_62, %c0_63], %87 {strides = array<i32>} : memref<1x32x2xf32, #tpu.memory_space<vmem>>, vector<1x32x2xf32>,
    } else {
    }
    return
  }
  func.func @transform_0(%arg0: i32, %arg1: i32) -> (i32, i32, i32, i32) {
    %c0_i32 = arith.constant 0 : i32
    %c0_i32_0 = arith.constant 0 : i32
    %c0_i32_1 = arith.constant 0 : i32
    return %arg0, %c0_i32, %c0_i32_0, %arg1 : i32, i32, i32, i32
  }
  func.func @transform_1(%arg0: i32, %arg1: i32) -> (i32, i32, i32) {
    %c0_i32 = arith.constant 0 : i32
    %c0_i32_0 = arith.constant 0 : i32
    %c0_i32_1 = arith.constant 0 : i32
    %c0_i32_2 = arith.constant 0 : i32
    return %c0_i32, %c0_i32_0, %c0_i32_1 : i32, i32, i32
  }
  func.func @transform_2(%arg0: i32, %arg1: i32) -> (i32, i32) {
    %c0_i32 = arith.constant 0 : i32
    %c0_i32_0 = arith.constant 0 : i32
    %c0_i32_1 = arith.constant 0 : i32
    return %c0_i32, %c0_i32_0 : i32, i32
  }
  func.func @transform_3(%arg0: i32, %arg1: i32) -> (i32, i32, i32, i32) {
    %c0_i32 = arith.constant 0 : i32
    %c0_i32_0 = arith.constant 0 : i32
    %c0_i32_1 = arith.constant 0 : i32
    return %arg0, %c0_i32, %c0_i32_0, %arg1 : i32, i32, i32, i32
  }
  func.func @transform_4(%arg0: i32, %arg1: i32) -> (i32, i32, i32) {
    %c0_i32 = arith.constant 0 : i32
    %c0_i32_0 = arith.constant 0 : i32
    %c0_i32_1 = arith.constant 0 : i32
    return %arg0, %c0_i32, %c0_i32_0 : i32, i32, i32
  }
}

</mosaic_0001>

<bundles_post_ra>
// kernel: up_conv_forward.3
= control target key start
LH: loop header
LB: loop body
LE: loop exit
PB: predicated region body
PF: predicated region fallthrough
CT: control target
= control target key end

     0   :  { %s676_s12 = smov 0   ;;  %s678_s13 = smov 0   ;;  %s816_s0 = inlined_call_operand.vmem [shape: bf16[2,4,32,256], index: 0, kind: input, shape index: {}]   ;;  %s817_s1 = inlined_call_operand.vmem [shape: f32[2,32,1], index: 1, kind: input, shape index: {}]   ;;  %s818_s2 = inlined_call_operand.vmem [shape: f32[2,32,1], index: 2, kind: input, shape index: {}]   ;;  %s819_s3 = inlined_call_operand.vmem [shape: f32[2,4,32,256], index: 3, kind: output, shape index: {}]  }
   0x1   :  { %s680_s14 = smov 0  }
   0x2 LB: > { %s25_s15 = sadd.s32 1, %s649_s13  ;;  %p589_p0 = scmp.ge.s32.totalorder %s653_s14, 1  ;;  %s653_s14 = sphi %s680_s14, %s13_s14   ;;  %s649_s13 = sphi %s678_s13, %s821_s13   ;;  %s645_s12 = sphi %s676_s12, %s820_s12  }
   0x3   : > { %p27_p1 = scmp.ge.s32.totalorder %s25_s15, 2  ;;  %p178_p2 = scmp.lt.s32.totalorder %s653_s14, 3 }
   0x5   : > { %s823_s15 = smov (%p27_p1, %s25_s15), 0  ;;  %p179_p3 = pnand %p589_p0, %p178_p2 }
   0x6   : > { %p221_p4 = scmp.lt.s32.totalorder (!%p179_p3), %s645_s12, 1  ;;  %v655_v0 = vmov (!%p179_p3), 0  }
   0x7   : > { %182 = sbr.rel (%p179_p3) target bundleno = 175 (0xaf), region = 32  ;;  %630 = vset.pattern.permute.xlu1 (!%p179_p3), %v655_v0  ;;  %629 = vset.pattern.permute.xlu0 (!%p179_p3), %v655_v0 }
   0xe   : > { %s825_s12 = smov (!%p221_p4, %s645_s12), 1 }
   0xf   : > { %s601_s16 = sshll.u32 %s825_s12, 5  ;;  %s600_s23 = sshll.u32 %s825_s12, 7 }
  0x10   : > { %s234_s19 = scalar_lea.vmem %s817_s1, %s601_s16  ;;  %s239_s22 = scalar_lea.vmem %s818_s2, %s601_s16 }
  0x11   : > { %v300_v1 = vld [vmem:[%s234_s19 + $0x10] sm:$0xff]  ;;  %v298_v2 = vld [vmem:[%s234_s19] sm:$0xff]  ;;  %v301_v3 = vld [vmem:[%s234_s19 + $0x18] sm:$0xff]  ;;  %s707_s26 = scalar_lea.vmem %s816_s0, %s600_s23  ;;  %s603_s27 = sshll.u32 %s825_s12, 8 }
  0x12   : > { %318 = vperm.xlu1 %630, %v300_v1   ;;  %308 = vperm.xlu0 %629, %v298_v2   ;;  %v299_v4 = vld [vmem:[%s234_s19 + $0x8] sm:$0xff]  ;;  %v302_v6 = vld [vmem:[%s239_s22] sm:$0xff]  ;;  %v305_v7 = vld [vmem:[%s239_s22 + $0x18] sm:$0xff]  ;;  %s765_s30 = scalar_lea.vmem %s819_s3, %s603_s27 }
  0x13   : > { %v303_v5 = vld [vmem:[%s239_s22 + $0x8] sm:$0xff]  ;;  %v304_v8 = vld [vmem:[%s239_s22 + $0x10] sm:$0xff]  ;;  %v250_v9 = vld [vmem:[%s707_s26] sm:$0xff] }
  0x14   : > { %v254_v10 = vld [vmem:[%s707_s26 + $0x20] sm:$0xff]  ;;  %v714_v13 = vld [vmem:[%s707_s26 + $0x8] sm:$0xff]  ;;  %v266_v15 = vunpack.c.l.bf16 %v250_v9  ;;  %v267_v16 = vunpack.c.h.bf16 %v250_v9  ;;  %v726_v25 = vld [vmem:[%s707_s26 + $0x18] sm:$0xff] }
  0x15   : > { %v258_v11 = vld [vmem:[%s707_s26 + $0x40] sm:$0xff]  ;;  %v717_v14 = vld [vmem:[%s707_s26 + $0x28] sm:$0xff]  ;;  %v274_v17 = vunpack.c.l.bf16 %v254_v10  ;;  %v275_v18 = vunpack.c.h.bf16 %v254_v10  ;;  %v252_v26 = vld [vmem:[%s707_s26 + $0x10] sm:$0xff]  ;;  %v268_v27 = vunpack.c.l.bf16 %v714_v13  ;;  %v269_v28 = vunpack.c.h.bf16 %v714_v13 }
  0x16   : > { %323 = vperm.xlu1 %630, %v301_v3   ;;  %313 = vperm.xlu0 %629, %v299_v4   ;;  %v262_v12 = vld [vmem:[%s707_s26 + $0x60] sm:$0xff]  ;;  %v720_v19 = vld [vmem:[%s707_s26 + $0x48] sm:$0xff]  ;;  %v282_v21 = vunpack.c.l.bf16 %v258_v11  ;;  %v283_v22 = vunpack.c.h.bf16 %v258_v11  ;;  %v276_v29 = vunpack.c.l.bf16 %v717_v14  ;;  %v277_v30 = vunpack.c.h.bf16 %v717_v14  ;;  %v257_v31 = vld [vmem:[%s707_s26 + $0x38] sm:$0xff] }
  0x17   : > { %v723_v20 = vld [vmem:[%s707_s26 + $0x68] sm:$0xff]  ;;  %v290_v23 = vunpack.c.l.bf16 %v262_v12  ;;  %v291_v24 = vunpack.c.h.bf16 %v262_v12  ;;  %v261_v32 = vld [vmem:[%s707_s26 + $0x58] sm:$0xff]  ;;  %v284_v33 = vunpack.c.l.bf16 %v720_v19  ;;  %v285_v34 = vunpack.c.h.bf16 %v720_v19  ;;  %v256_v38 = vld [vmem:[%s707_s26 + $0x30] sm:$0xff] }
  0x18   : > { %v292_v35 = vunpack.c.l.bf16 %v723_v20  ;;  %v293_v36 = vunpack.c.h.bf16 %v723_v20  ;;  %v265_v37 = vld [vmem:[%s707_s26 + $0x78] sm:$0xff]  ;;  %v272_v39 = vunpack.c.l.bf16 %v726_v25  ;;  %v273_v40 = vunpack.c.h.bf16 %v726_v25  ;;  %v260_v41 = vld [vmem:[%s707_s26 + $0x50] sm:$0xff] }
  0x19   : > { %v264_v42 = vld [vmem:[%s707_s26 + $0x70] sm:$0xff]  ;;  %v270_v43 = vunpack.c.l.bf16 %v252_v26  ;;  %v271_v44 = vunpack.c.h.bf16 %v252_v26  ;;  %v280_v45 = vunpack.c.l.bf16 %v257_v31  ;;  %v281_v46 = vunpack.c.h.bf16 %v257_v31 }
  0x1a   : > { %365 = vperm.xlu1 %630, %v303_v5   ;;  %360 = vperm.xlu0 %629, %v302_v6   ;;  %v288_v47 = vunpack.c.l.bf16 %v261_v32  ;;  %v289_v48 = vunpack.c.h.bf16 %v261_v32  ;;  %v296_v49 = vunpack.c.l.bf16 %v265_v37  ;;  %v297_v50 = vunpack.c.h.bf16 %v265_v37 }
  0x1b   : > { %v278_v51 = vunpack.c.l.bf16 %v256_v38  ;;  %v279_v52 = vunpack.c.h.bf16 %v256_v38  ;;  %v286_v55 = vunpack.c.l.bf16 %v260_v41  ;;  %v287_v56 = vunpack.c.h.bf16 %v260_v41 }
  0x1c   : > { %v294_v57 = vunpack.c.l.bf16 %v264_v42  ;;  %v295_v58 = vunpack.c.h.bf16 %v264_v42 }
  0x1e   : > { %375 = vperm.xlu1 %630, %v305_v7   ;;  %370 = vperm.xlu0 %629, %v304_v8  }
  0x91   : > { %v319_v53 = vpop.permute.xlu1 %318  ;;  %v309_v54 = vpop.permute.xlu0 %308 }
  0x92   : > { %v326_v59 = vmul.f32 %v309_v54, %v266_v15  ;;  %v327_v60 = vmul.f32 %v309_v54, %v267_v16  ;;  %v334_v61 = vmul.f32 %v309_v54, %v274_v17  ;;  %v335_v62 = vmul.f32 %v309_v54, %v275_v18 }
  0x93   : > { %v342_v63 = vmul.f32 %v309_v54, %v282_v21  ;;  %v343_v0 = vmul.f32 %v309_v54, %v283_v22  ;;  %v350_v1 = vmul.f32 %v309_v54, %v290_v23  ;;  %v351_v2 = vmul.f32 %v309_v54, %v291_v24 }
  0x94   : > { %v745_v3 = vmul.f32 %v319_v53, %v270_v43  ;;  %v747_v4 = vmul.f32 %v319_v53, %v271_v44  ;;  %v749_v5 = vmul.f32 %v319_v53, %v278_v51  ;;  %v751_v6 = vmul.f32 %v319_v53, %v279_v52 }
  0x95   : > { %v324_v7 = vpop.permute.xlu1 %323  ;;  %v314_v8 = vpop.permute.xlu0 %313  ;;  %v753_v9 = vmul.f32 %v319_v53, %v286_v55  ;;  %v755_v10 = vmul.f32 %v319_v53, %v287_v56  ;;  %v757_v11 = vmul.f32 %v319_v53, %v294_v57  ;;  %v759_v12 = vmul.f32 %v319_v53, %v295_v58 }
  0x96   : > { %v328_v13 = vmul.f32 %v314_v8, %v268_v27  ;;  %v329_v14 = vmul.f32 %v314_v8, %v269_v28  ;;  %v336_v15 = vmul.f32 %v314_v8, %v276_v29  ;;  %v337_v16 = vmul.f32 %v314_v8, %v277_v30 }
  0x97   : > { %v344_v17 = vmul.f32 %v314_v8, %v284_v33  ;;  %v345_v18 = vmul.f32 %v314_v8, %v285_v34  ;;  %v352_v19 = vmul.f32 %v314_v8, %v292_v35  ;;  %v353_v20 = vmul.f32 %v314_v8, %v293_v36 }
  0x98   : > { %v332_v21 = vmul.f32 %v324_v7, %v272_v39  ;;  %v333_v22 = vmul.f32 %v324_v7, %v273_v40  ;;  %v340_v23 = vmul.f32 %v324_v7, %v280_v45  ;;  %v341_v24 = vmul.f32 %v324_v7, %v281_v46 }
  0x99   : > { %v366_v25 = vpop.permute.xlu1 %365  ;;  %v348_v26 = vmul.f32 %v324_v7, %v288_v47  ;;  %v349_v31 = vmul.f32 %v324_v7, %v289_v48  ;;  %v356_v32 = vmul.f32 %v324_v7, %v296_v49  ;;  %v357_v37 = vmul.f32 %v324_v7, %v297_v50  ;;  %v361_v35 = vpop.permute.xlu0 %360 }
  0x9a   : > { %v380_v38 = vadd.f32 %v366_v25, %v328_v13  ;;  %v381_v41 = vadd.f32 %v366_v25, %v329_v14  ;;  %v388_v27 = vadd.f32 %v366_v25, %v336_v15  ;;  %v389_v28 = vadd.f32 %v366_v25, %v337_v16 }
  0x9b   : > { %v396_v29 = vadd.f32 %v366_v25, %v344_v17  ;;  %v397_v30 = vadd.f32 %v366_v25, %v345_v18  ;;  %v404_v33 = vadd.f32 %v366_v25, %v352_v19  ;;  %v405_v34 = vadd.f32 %v366_v25, %v353_v20 }
  0x9c   : > { %v412_v36 = vmax.f32 %v380_v38, 0.0  ;;  %v413_v39 = vmax.f32 %v381_v41, 0.0  ;;  %v420_v40 = vmax.f32 %v388_v27, 0.0  ;;  %v421_v42 = vmax.f32 %v389_v28, 0.0 }
  0x9d   : > { %v428_v43 = vmax.f32 %v396_v29, 0.0  ;;  %v429_v44 = vmax.f32 %v397_v30, 0.0  ;;  %v436_v45 = vmax.f32 %v404_v33, 0.0  ;;  %v437_v46 = vmax.f32 %v405_v34, 0.0  ;;  %v376_v55 = vpop.permute.xlu1 %375  ;;  %v371_v16 = vpop.permute.xlu0 %370 }
  0x9e   : > { %444 = vst [vmem:[%s765_s30 + $0x10] sm:$0xff] %v412_v36  ;;  %445 = vst [vmem:[%s765_s30 + $0x18] sm:$0xff] %v413_v39  ;;  %v378_v47 = vadd.f32 %v361_v35, %v326_v59  ;;  %v379_v48 = vadd.f32 %v361_v35, %v327_v60  ;;  %v386_v49 = vadd.f32 %v361_v35, %v334_v61 }
  0x9f   : > { %452 = vst [vmem:[%s765_s30 + $0x50] sm:$0xff] %v420_v40  ;;  %453 = vst [vmem:[%s765_s30 + $0x58] sm:$0xff] %v421_v42  ;;  %v387_v50 = vadd.f32 %v361_v35, %v335_v62  ;;  %v394_v51 = vadd.f32 %v361_v35, %v342_v63  ;;  %v395_v52 = vadd.f32 %v361_v35, %v343_v0 }
  0xa0   : > { %460 = vst [vmem:[%s765_s30 + $0x90] sm:$0xff] %v428_v43  ;;  %461 = vst [vmem:[%s765_s30 + $0x98] sm:$0xff] %v429_v44  ;;  %v402_v53 = vadd.f32 %v361_v35, %v350_v1  ;;  %v403_v54 = vadd.f32 %v361_v35, %v351_v2  ;;  %v410_v56 = vmax.f32 %v378_v47, 0.0  ;;  %v411_v57 = vmax.f32 %v379_v48, 0.0 }
  0xa1   : > { %468 = vst [vmem:[%s765_s30 + $0xd0] sm:$0xff] %v436_v45  ;;  %469 = vst [vmem:[%s765_s30 + $0xd8] sm:$0xff] %v437_v46  ;;  %v418_v58 = vmax.f32 %v386_v49, 0.0  ;;  %v419_v59 = vmax.f32 %v387_v50, 0.0  ;;  %v426_v60 = vmax.f32 %v394_v51, 0.0  ;;  %v427_v61 = vmax.f32 %v395_v52, 0.0 }
  0xa2   : > { %v434_v62 = vmax.f32 %v402_v53, 0.0  ;;  %v435_v7 = vmax.f32 %v403_v54, 0.0  ;;  %442 = vst [vmem:[%s765_s30] sm:$0xff] %v410_v56  ;;  %443 = vst [vmem:[%s765_s30 + $0x8] sm:$0xff] %v411_v57  ;;  %v384_v63 = vadd.f32 %v376_v55, %v332_v21  ;;  %v385_v0 = vadd.f32 %v376_v55, %v333_v22 }
  0xa3   : > { %450 = vst [vmem:[%s765_s30 + $0x40] sm:$0xff] %v418_v58  ;;  %451 = vst [vmem:[%s765_s30 + $0x48] sm:$0xff] %v419_v59  ;;  %v392_v1 = vadd.f32 %v376_v55, %v340_v23  ;;  %v393_v2 = vadd.f32 %v376_v55, %v341_v24  ;;  %v400_v8 = vadd.f32 %v376_v55, %v348_v26 }
  0xa4   : > { %458 = vst [vmem:[%s765_s30 + $0x80] sm:$0xff] %v426_v60  ;;  %459 = vst [vmem:[%s765_s30 + $0x88] sm:$0xff] %v427_v61  ;;  %v401_v13 = vadd.f32 %v376_v55, %v349_v31  ;;  %v408_v14 = vadd.f32 %v376_v55, %v356_v32  ;;  %v409_v15 = vadd.f32 %v376_v55, %v357_v37  ;;  %v416_v17 = vmax.f32 %v384_v63, 0.0 }
  0xa5   : > { %466 = vst [vmem:[%s765_s30 + $0xc0] sm:$0xff] %v434_v62  ;;  %467 = vst [vmem:[%s765_s30 + $0xc8] sm:$0xff] %v435_v7  ;;  %v417_v18 = vmax.f32 %v385_v0, 0.0  ;;  %v424_v19 = vmax.f32 %v392_v1, 0.0  ;;  %v425_v20 = vmax.f32 %v393_v2, 0.0  ;;  %v432_v21 = vmax.f32 %v400_v8, 0.0 }
  0xa6   : > { %v433_v22 = vmax.f32 %v401_v13, 0.0  ;;  %v440_v23 = vmax.f32 %v408_v14, 0.0  ;;  %v441_v24 = vmax.f32 %v409_v15, 0.0  ;;  %448 = vst [vmem:[%s765_s30 + $0x30] sm:$0xff] %v416_v17  ;;  %v382_v25 = vadd.f32 %v371_v16, %v745_v3 }
  0xa7   : > { %449 = vst [vmem:[%s765_s30 + $0x38] sm:$0xff] %v417_v18  ;;  %456 = vst [vmem:[%s765_s30 + $0x70] sm:$0xff] %v424_v19  ;;  %v383_v26 = vadd.f32 %v371_v16, %v747_v4  ;;  %v390_v31 = vadd.f32 %v371_v16, %v749_v5  ;;  %v391_v32 = vadd.f32 %v371_v16, %v751_v6 }
  0xa8   : > { %457 = vst [vmem:[%s765_s30 + $0x78] sm:$0xff] %v425_v20  ;;  %464 = vst [vmem:[%s765_s30 + $0xb0] sm:$0xff] %v432_v21  ;;  %v398_v37 = vadd.f32 %v371_v16, %v753_v9  ;;  %v399_v38 = vadd.f32 %v371_v16, %v755_v10  ;;  %v406_v3 = vadd.f32 %v371_v16, %v757_v11  ;;  %v414_v5 = vmax.f32 %v382_v25, 0.0 }
  0xa9   : > { %465 = vst [vmem:[%s765_s30 + $0xb8] sm:$0xff] %v433_v22  ;;  %472 = vst [vmem:[%s765_s30 + $0xf0] sm:$0xff] %v440_v23  ;;  %v407_v4 = vadd.f32 %v371_v16, %v759_v12  ;;  %v415_v6 = vmax.f32 %v383_v26, 0.0  ;;  %v422_v41 = vmax.f32 %v390_v31, 0.0  ;;  %v423_v27 = vmax.f32 %v391_v32, 0.0 }
  0xaa   : > { %473 = vst [vmem:[%s765_s30 + $0xf8] sm:$0xff] %v441_v24  ;;  %v430_v28 = vmax.f32 %v398_v37, 0.0  ;;  %v431_v29 = vmax.f32 %v399_v38, 0.0  ;;  %v438_v30 = vmax.f32 %v406_v3, 0.0  ;;  %446 = vst [vmem:[%s765_s30 + $0x20] sm:$0xff] %v414_v5 }
  0xab   : > { %v439_v33 = vmax.f32 %v407_v4, 0.0  ;;  %447 = vst [vmem:[%s765_s30 + $0x28] sm:$0xff] %v415_v6  ;;  %454 = vst [vmem:[%s765_s30 + $0x60] sm:$0xff] %v422_v41 }
  0xac   : > { %455 = vst [vmem:[%s765_s30 + $0x68] sm:$0xff] %v423_v27  ;;  %462 = vst [vmem:[%s765_s30 + $0xa0] sm:$0xff] %v430_v28 }
  0xad   : > { %463 = vst [vmem:[%s765_s30 + $0xa8] sm:$0xff] %v431_v29  ;;  %470 = vst [vmem:[%s765_s30 + $0xe0] sm:$0xff] %v438_v30 }
  0xae   : > { %471 = vst [vmem:[%s765_s30 + $0xe8] sm:$0xff] %v439_v33 }
  0xaf PF: > { %s13_s14 = sadd.s32 1, %s653_s14   ;;  %s820_s12 = smov %s649_s13 }
  0xb0   : > { %p10_p5 = scmp.ge.s32.totalorder %s13_s14, 4   ;;  %s821_s13 = smov %s823_s15 }
  0xb2   :  { %12 = sbr.rel (!%p10_p5) target bundleno = 2 (0x2), region = 68 }

// kernel: up_conv_forward.2
= control target key start
LH: loop header
LB: loop body
LE: loop exit
PB: predicated region body
PF: predicated region fallthrough
CT: control target
= control target key end

     0   :  { %s1247_s15 = smov 0   ;;  %s1249_s16 = smov 0   ;;  %s1431_s0 = inlined_call_operand.vmem [shape: bf16[2,4,16,256], index: 0, kind: input, shape index: {}]   ;;  %s1432_s1 = inlined_call_operand.vmem [shape: bf16[4,32,16], index: 1, kind: input, shape index: {}]   ;;  %s1433_s2 = inlined_call_operand.vmem [shape: f32[32,1], index: 2, kind: input, shape index: {}]   ;;  %s1434_s3 = inlined_call_operand.vmem [shape: bf16[2,4,32,256], index: 3, kind: output, shape index: {0}]   ;;  %s1435_s4 = inlined_call_operand.vmem [shape: f32[2,32,2], index: 4, kind: output, shape index: {1}]  }
   0x1   :  { %s1251_s17 = smov 0  }
   0x2 LB: > { %s27_s18 = sadd.s32 1, %s1215_s16  ;;  %p1052_p0 = scmp.ge.s32.totalorder %s1219_s17, 1  ;;  %s1219_s17 = sphi %s1251_s17, %s15_s17   ;;  %s1215_s16 = sphi %s1249_s16, %s1437_s16   ;;  %s1211_s15 = sphi %s1247_s15, %s1436_s15  }
   0x3   : > { %p29_p1 = scmp.ge.s32.totalorder %s27_s18, 2  ;;  %p186_p2 = scmp.lt.s32.totalorder %s1219_s17, 3 }
   0x5   : > { %s1439_s18 = smov (%p29_p1, %s27_s18), 0  ;;  %p187_p3 = pnand %p1052_p0, %p186_p2 }
   0x6   : > { %p226_p4 = scmp.lt.s32.totalorder (!%p187_p3), %s1211_s15, 1  ;;  %v1221_v0 = vmov (!%p187_p3), 0   ;;  %v1183_v3 = vld [vmem:[%s1432_s1] sm:$0xff] (!%p187_p3)   ;;  %v1184_v6 = vld [vmem:[%s1432_s1 + $0x10] sm:$0xff] (!%p187_p3)   ;;  %vm301_vm0 = vcmask (!%p187_p3), 130048   ;;  %v1185_v13 = vld [vmem:[%s1432_s1 + $0x8] sm:$0xff] (!%p187_p3)  }
   0x7   : > { %190 = sbr.rel (%p187_p3) target bundleno = 450 (0x1c2), region = 32  ;;  %340 = vmatprep.mubr.bf16.mxu0 (!%p187_p3), %v1221_v0  ;;  %495 = vmatprep.mubr.bf16.mxu1 (!%p187_p3), %v1221_v0  ;;  %v251_v11 = vld [vmem:[%s1433_s2] sm:$0xff] (!%p187_p3)  ;;  %v253_v12 = vld [vmem:[%s1433_s2 + $0x10] sm:$0xff] (!%p187_p3)  ;;  %v1186_v14 = vld [vmem:[%s1432_s1 + $0x18] sm:$0xff] (!%p187_p3)   ;;  %vm897_vm1 = vcmask (!%p187_p3), 7168   ;;  %vm906_vm2 = vcmask (!%p187_p3), 15360  }
   0x8   : > { %1175 = vset.pattern.permute.xlu0 (!%p187_p3), %v1221_v0  ;;  %1176 = vset.pattern.permute.xlu1 (!%p187_p3), %v1221_v0  ;;  %v252_v15 = vld [vmem:[%s1433_s2 + $0x8] sm:$0xff] (!%p187_p3)  ;;  %v254_v16 = vld [vmem:[%s1433_s2 + $0x18] sm:$0xff] (!%p187_p3)  ;;  %v1193_v17 = vld [vmem:[%s1432_s1 + $0x20] sm:$0xff] (!%p187_p3)  }
   0x9   : > { %263 = vperm.xlu0 (!%p187_p3), %1175, %v251_v11   ;;  %273 = vperm.xlu1 (!%p187_p3), %1176, %v253_v12   ;;  %v1194_v18 = vld [vmem:[%s1432_s1 + $0x30] sm:$0xff] (!%p187_p3)   ;;  %v1195_v19 = vld [vmem:[%s1432_s1 + $0x28] sm:$0xff] (!%p187_p3)   ;;  %v1196_v20 = vld [vmem:[%s1432_s1 + $0x38] sm:$0xff] (!%p187_p3)  }
   0xd   : > { %268 = vperm.xlu0 (!%p187_p3), %1175, %v252_v15   ;;  %278 = vperm.xlu1 (!%p187_p3), %1176, %v254_v16  }
   0xe   : > { %s1441_s15 = smov (!%p226_p4, %s1211_s15), 1 }
   0xf   : > { %s1131_s19 = sshll.u32 %s1441_s15, 6  ;;  %s1132_s25 = sshll.u32 %s1441_s15, 7 }
  0x10   : > { %s233_s22 = scalar_lea.vmem %s1431_s0, %s1131_s19  ;;  %s1329_s28 = scalar_lea.vmem %s1434_s3, %s1132_s25 }
  0x11   : > { %v1177_v1 = vld [vmem:[%s233_s22 + $0x4] ss:$8 sps:$4 sm:$0xff]   ;;  %v1179_v2 = vld [vmem:[%s233_s22 + $0x14] ss:$8 sps:$4 sm:$0xff]   ;;  %v1181_v4 = vld [vmem:[%s233_s22] ss:$8 sps:$4 sm:$0xff]  }
  0x12   : > { %308 = vmatprep.subr.bf16.mxu0 %v1177_v1  ;;  %v1182_v5 = vld [vmem:[%s233_s22 + $0x10] ss:$8 sps:$4 sm:$0xff]   ;;  %463 = vmatprep.subr.bf16.mxu1 %v1179_v2  ;;  %v1189_v7 = vld [vmem:[%s233_s22 + $0x24] ss:$8 sps:$4 sm:$0xff]   ;;  %v1187_v8 = vld [vmem:[%s233_s22 + $0x20] ss:$8 sps:$4 sm:$0xff]  }
  0x13   : > { %309 = vmatpush1.bf16.msra.mxu0 %v1181_v4  ;;  %464 = vmatpush1.bf16.msra.mxu1 %v1182_v5  ;;  %v1192_v9 = vld [vmem:[%s233_s22 + $0x34] ss:$8 sps:$4 sm:$0xff]   ;;  %v1190_v10 = vld [vmem:[%s233_s22 + $0x30] ss:$8 sps:$4 sm:$0xff]   ;;  %s1133_s29 = sshll.u32 %s1441_s15, 5 }
  0x14   : > { %619 = vmatprep.subr.bf16.mxu0 %v1189_v7  ;;  %775 = vmatprep.subr.bf16.mxu1 %v1192_v9  ;;  %s1408_s6 = scalar_lea.vmem %s1435_s4, %s1133_s29 }
  0x16   : > { %1063 = vmatmul.mubr.msk.bf16.vlgmr.msra.gmra.mrb[0].mxu0 %vm301_vm0, %v1183_v3  ;;  %1079 = vmatmul.mubr.msk.bf16.vlgmr.msra.gmra.mrb[0].mxu1 %vm301_vm0, %v1184_v6 }
  0x17   : > { %350 = vmatprep.mubr.bf16.mxu0 %v1221_v0  ;;  %505 = vmatprep.mubr.bf16.mxu1 %v1221_v0 }
  0x18   : > { %620 = vmatpush1.bf16.msra.mxu0 %v1187_v8  ;;  %776 = vmatpush1.bf16.msra.mxu1 %v1190_v10 }
  0x1e   : > { %1064 = vmatmul.mubr.msk.bf16.gmra.mrb[4].mxu0 %vm301_vm0, %v1185_v13  ;;  %1080 = vmatmul.mubr.msk.bf16.gmra.mrb[4].mxu1 %vm301_vm0, %v1186_v14 }
  0x1f   : > { %651 = vmatprep.mubr.bf16.mxu0 %v1221_v0  ;;  %807 = vmatprep.mubr.bf16.mxu1 %v1221_v0 }
  0x26   : > { %1099 = vmatmul.mubr.msk.bf16.vlgmr.msra.gmra.mrb[8].mxu0 %vm301_vm0, %v1193_v17  ;;  %1119 = vmatmul.mubr.msk.bf16.vlgmr.msra.gmra.mrb[8].mxu1 %vm301_vm0, %v1194_v18 }
  0x27   : > { %661 = vmatprep.mubr.bf16.mxu0 %v1221_v0  ;;  %817 = vmatprep.mubr.bf16.mxu1 %v1221_v0 }
  0x2e   : > { %1100 = vmatmul.mubr.msk.bf16.gmra.mrb[12].mxu0 %vm301_vm0, %v1195_v19  ;;  %1120 = vmatmul.mubr.msk.bf16.gmra.mrb[12].mxu1 %vm301_vm0, %v1196_v20 }
  0x88   : > { %v1315_v21 = vpop.permute.xlu0 %263  ;;  %v1319_v23 = vpop.permute.xlu1 %273 }
  0x8c   : > { %v1317_v22 = vpop.permute.xlu0 %268  ;;  %v1337_v54 = vpop.permute.xlu1 %278 }
  0xe9   : > { %v342_v24 = vpop.f32.mrb[0].mxu0  ;;  %v497_v25 = vpop.f32.mrb[0].mxu1 }
  0xea   : > { %v343_v26 = vadd.f32 %v342_v24, %v1315_v21  ;;  %v498_v27 = vadd.f32 %v497_v25, %v1315_v21  ;;  %v344_v28 = vpop.f32.mrb[1].mxu0  ;;  %v499_v29 = vpop.f32.mrb[1].mxu1 }
  0xeb   : > { %v345_v30 = vadd.f32 %v344_v28, %v1315_v21  ;;  %v500_v31 = vadd.f32 %v499_v29, %v1315_v21  ;;  %v346_v32 = vpop.f32.mrb[2].mxu0  ;;  %v501_v33 = vpop.f32.mrb[2].mxu1 }
  0xec   : > { %v347_v34 = vadd.f32 %v346_v32, %v1317_v22  ;;  %v502_v35 = vadd.f32 %v501_v33, %v1317_v22  ;;  %v348_v36 = vpop.f32.mrb[3].mxu0  ;;  %v503_v37 = vpop.f32.mrb[3].mxu1  ;;  %v405_v38 = vmul.f32 %v343_v26, %v343_v26  ;;  %v561_v39 = vmul.f32 %v498_v27, %v498_v27 }
  0xed   : > { %v1134_v40 = vpack.c.bf16 %v345_v30, %v343_v26  ;;  %v1138_v41 = vpack.c.bf16 %v500_v31, %v498_v27  ;;  %v349_v42 = vadd.f32 %v348_v36, %v1317_v22  ;;  %v504_v43 = vadd.f32 %v503_v37, %v1317_v22 }
  0xee   : > { %v545_v44 = vadd.f32 %v500_v31, %v498_v27  ;;  %v389_v45 = vadd.f32 %v345_v30, %v343_v26  ;;  %v406_v46 = vmul.f32 %v345_v30, %v345_v30  ;;  %v407_v47 = vmul.f32 %v347_v34, %v347_v34 }
  0xef   : > { %385 = vst [vmem:[%s1329_s28] sm:$0xff] %v1134_v40  ;;  %1085 = vst [vmem:[%s1329_s28 + $0x20] sm:$0xff] %v1138_v41  ;;  %v1135_v48 = vpack.c.bf16 %v349_v42, %v347_v34  ;;  %v1139_v49 = vpack.c.bf16 %v504_v43, %v502_v35  ;;  %v392_v50 = vadd.f32 %v349_v42, %v347_v34 }
  0xf0   : > { %v548_v51 = vadd.f32 %v504_v43, %v502_v35  ;;  %546 = vadd.xlane.f32.xlu1 %v545_v44  ;;  %390 = vadd.xlane.f32.xlu0 %v389_v45  ;;  %v413_v52 = vadd.f32 %v406_v46, %v405_v38  ;;  %v408_v53 = vmul.f32 %v349_v42, %v349_v42 }
  0xf1   : > { %v562_v55 = vmul.f32 %v500_v31, %v500_v31  ;;  %386 = vst [vmem:[%s1329_s28 + $0x8] sm:$0xff] %v1135_v48  ;;  %1086 = vst [vmem:[%s1329_s28 + $0x28] sm:$0xff] %v1139_v49  ;;  %v352_v56 = vpop.f32.mrb[4].mxu0  ;;  %v507_v57 = vpop.f32.mrb[4].mxu1  ;;  %v563_v58 = vmul.f32 %v502_v35, %v502_v35  ;;  %v564_v59 = vmul.f32 %v504_v43, %v504_v43 }
  0xf2   : > { %v353_v60 = vadd.f32 %v352_v56, %v1319_v23  ;;  %v508_v61 = vadd.f32 %v507_v57, %v1319_v23  ;;  %v354_v62 = vpop.f32.mrb[5].mxu0  ;;  %v509_v63 = vpop.f32.mrb[5].mxu1  ;;  %v416_v0 = vadd.f32 %v408_v53, %v407_v47 }
  0xf3   : > { %v569_v1 = vadd.f32 %v562_v55, %v561_v39  ;;  %v355_v2 = vadd.f32 %v354_v62, %v1319_v23  ;;  %v510_v3 = vadd.f32 %v509_v63, %v1319_v23  ;;  %v356_v4 = vpop.f32.mrb[6].mxu0  ;;  %v511_v5 = vpop.f32.mrb[6].mxu1  ;;  %v572_v6 = vadd.f32 %v564_v59, %v563_v58 }
  0xf4   : > { %393 = vadd.xlane.f32.xlu1 %v392_v50  ;;  %549 = vadd.xlane.f32.xlu0 %v548_v51  ;;  %v358_v7 = vpop.f32.mrb[7].mxu0  ;;  %v513_v8 = vpop.f32.mrb[7].mxu1  ;;  %v409_v9 = vmul.f32 %v353_v60, %v353_v60  ;;  %v357_v10 = vadd.f32 %v356_v4, %v1337_v54  ;;  %v565_v11 = vmul.f32 %v508_v61, %v508_v61 }
  0xf5   : > { %v1136_v12 = vpack.c.bf16 %v355_v2, %v353_v60  ;;  %v1140_v13 = vpack.c.bf16 %v510_v3, %v508_v61  ;;  %v551_v14 = vadd.f32 %v510_v3, %v508_v61  ;;  %v395_v15 = vadd.f32 %v355_v2, %v353_v60 }
  0xf6   : > { %v410_v16 = vmul.f32 %v355_v2, %v355_v2  ;;  %v359_v17 = vadd.f32 %v358_v7, %v1337_v54  ;;  %v566_v18 = vmul.f32 %v510_v3, %v510_v3  ;;  %v512_v19 = vadd.f32 %v511_v5, %v1337_v54 }
  0xf7   : > { %387 = vst [vmem:[%s1329_s28 + $0x10] sm:$0xff] %v1136_v12  ;;  %1087 = vst [vmem:[%s1329_s28 + $0x30] sm:$0xff] %v1140_v13  ;;  %v514_v20 = vadd.f32 %v513_v8, %v1337_v54  ;;  %v411_v24 = vmul.f32 %v357_v10, %v357_v10 }
  0xf8   : > { %414 = vadd.xlane.f32.xlu1 %v413_v52  ;;  %417 = vadd.xlane.f32.xlu0 %v416_v0  ;;  %v1351_v25 = vadd.f32 %v410_v16, %v409_v9  ;;  %v1137_v26 = vpack.c.bf16 %v359_v17, %v357_v10  ;;  %v1353_v27 = vadd.f32 %v359_v17, %v357_v10 }
  0xf9   : > { %v653_v28 = vpop.f32.mrb[8].mxu0  ;;  %v809_v29 = vpop.f32.mrb[8].mxu1  ;;  %v1355_v30 = vadd.f32 %v566_v18, %v565_v11  ;;  %v1141_v31 = vpack.c.bf16 %v514_v20, %v512_v19  ;;  %v1357_v32 = vadd.f32 %v514_v20, %v512_v19  ;;  %v412_v33 = vmul.f32 %v359_v17, %v359_v17 }
  0xfa   : > { %v654_v34 = vadd.f32 %v653_v28, %v1315_v21  ;;  %v810_v35 = vadd.f32 %v809_v29, %v1315_v21  ;;  %v655_v36 = vpop.f32.mrb[9].mxu0  ;;  %v811_v37 = vpop.f32.mrb[9].mxu1  ;;  %388 = vst [vmem:[%s1329_s28 + $0x18] sm:$0xff] %v1137_v26  ;;  %v567_v38 = vmul.f32 %v512_v19, %v512_v19  ;;  %v568_v39 = vmul.f32 %v514_v20, %v514_v20 }
  0xfb   : > { %v656_v40 = vadd.f32 %v655_v36, %v1315_v21  ;;  %v812_v41 = vadd.f32 %v811_v37, %v1315_v21  ;;  %v657_v42 = vpop.f32.mrb[10].mxu0  ;;  %v813_v43 = vpop.f32.mrb[10].mxu1  ;;  %1088 = vst [vmem:[%s1329_s28 + $0x38] sm:$0xff] %v1141_v31  ;;  %v1365_v44 = vadd.f32 %v412_v33, %v411_v24 }
  0xfc   : > { %v658_v45 = vadd.f32 %v657_v42, %v1317_v22  ;;  %v814_v46 = vadd.f32 %v813_v43, %v1317_v22  ;;  %570 = vadd.xlane.f32.xlu1 %v569_v1  ;;  %573 = vadd.xlane.f32.xlu0 %v572_v6  ;;  %v659_v47 = vpop.f32.mrb[11].mxu0  ;;  %v815_v48 = vpop.f32.mrb[11].mxu1  ;;  %v1369_v49 = vadd.f32 %v568_v39, %v567_v38 }
  0xfd   : > { %v1142_v50 = vpack.c.bf16 %v656_v40, %v654_v34  ;;  %v1146_v51 = vpack.c.bf16 %v812_v41, %v810_v35  ;;  %v660_v21 = vadd.f32 %v659_v47, %v1317_v22  ;;  %v816_v52 = vadd.f32 %v815_v48, %v1317_v22 }
  0xfe   : > { %v1373_v53 = vadd.f32 %v656_v40, %v654_v34  ;;  %v1375_v55 = vadd.f32 %v812_v41, %v810_v35  ;;  %v717_v56 = vmul.f32 %v654_v34, %v654_v34  ;;  %v718_v57 = vmul.f32 %v656_v40, %v656_v40 }
  0xff   : > { %1105 = vst [vmem:[%s1329_s28 + $0x40] sm:$0xff] %v1142_v50  ;;  %1125 = vst [vmem:[%s1329_s28 + $0x60] sm:$0xff] %v1146_v51  ;;  %v1143_v58 = vpack.c.bf16 %v660_v21, %v658_v45  ;;  %v1147_v59 = vpack.c.bf16 %v816_v52, %v814_v46  ;;  %v1379_v60 = vadd.f32 %v660_v21, %v658_v45 }
 0x100   : > { %v873_v61 = vmul.f32 %v810_v35, %v810_v35  ;;  %552 = vadd.xlane.f32.xlu1 %v551_v14  ;;  %396 = vadd.xlane.f32.xlu0 %v395_v15  ;;  %v725_v62 = vadd.f32 %v718_v57, %v717_v56  ;;  %v874_v63 = vmul.f32 %v812_v41, %v812_v41 }
 0x101   : > { %v860_v22 = vadd.f32 %v816_v52, %v814_v46  ;;  %1106 = vst [vmem:[%s1329_s28 + $0x48] sm:$0xff] %v1143_v58  ;;  %1126 = vst [vmem:[%s1329_s28 + $0x68] sm:$0xff] %v1147_v59  ;;  %v663_v0 = vpop.f32.mrb[12].mxu0  ;;  %v819_v1 = vpop.f32.mrb[12].mxu1  ;;  %v719_v2 = vmul.f32 %v658_v45, %v658_v45  ;;  %v720_v3 = vmul.f32 %v660_v21, %v660_v21 }
 0x102   : > { %v875_v4 = vmul.f32 %v814_v46, %v814_v46  ;;  %v876_v5 = vmul.f32 %v816_v52, %v816_v52  ;;  %v664_v6 = vadd.f32 %v663_v0, %v1319_v23  ;;  %v820_v7 = vadd.f32 %v819_v1, %v1319_v23  ;;  %v665_v8 = vpop.f32.mrb[13].mxu0  ;;  %v821_v9 = vpop.f32.mrb[13].mxu1 }
 0x103   : > { %v881_v10 = vadd.f32 %v874_v63, %v873_v61  ;;  %v666_v11 = vadd.f32 %v665_v8, %v1319_v23  ;;  %v822_v12 = vadd.f32 %v821_v9, %v1319_v23  ;;  %v667_v13 = vpop.f32.mrb[14].mxu0  ;;  %v823_v14 = vpop.f32.mrb[14].mxu1  ;;  %v728_v15 = vadd.f32 %v720_v3, %v719_v2 }
 0x104   : > { %v884_v16 = vadd.f32 %v876_v5, %v875_v4  ;;  %v668_v17 = vadd.f32 %v667_v13, %v1337_v54  ;;  %v824_v18 = vadd.f32 %v823_v14, %v1337_v54  ;;  %420 = vadd.xlane.f32.xlu1 %v1351_v25  ;;  %399 = vadd.xlane.f32.xlu0 %v1353_v27  ;;  %v669_v19 = vpop.f32.mrb[15].mxu0  ;;  %v825_v20 = vpop.f32.mrb[15].mxu1 }
 0x105   : > { %v721_v24 = vmul.f32 %v664_v6, %v664_v6  ;;  %v1144_v26 = vpack.c.bf16 %v666_v11, %v664_v6  ;;  %v1148_v28 = vpack.c.bf16 %v822_v12, %v820_v7  ;;  %v670_v23 = vadd.f32 %v669_v19, %v1337_v54 }
 0x106   : > { %v826_v29 = vadd.f32 %v825_v20, %v1337_v54  ;;  %v707_v31 = vadd.f32 %v666_v11, %v664_v6  ;;  %v863_v33 = vadd.f32 %v822_v12, %v820_v7  ;;  %v722_v34 = vmul.f32 %v666_v11, %v666_v11 }
 0x107   : > { %v877_v35 = vmul.f32 %v820_v7, %v820_v7  ;;  %1107 = vst [vmem:[%s1329_s28 + $0x50] sm:$0xff] %v1144_v26  ;;  %1127 = vst [vmem:[%s1329_s28 + $0x70] sm:$0xff] %v1148_v28  ;;  %v1145_v25 = vpack.c.bf16 %v670_v23, %v668_v17  ;;  %v710_v27 = vadd.f32 %v670_v23, %v668_v17 }
 0x108   : > { %v1149_v36 = vpack.c.bf16 %v826_v29, %v824_v18  ;;  %v878_v37 = vmul.f32 %v822_v12, %v822_v12  ;;  %576 = vadd.xlane.f32.xlu1 %v1355_v30  ;;  %555 = vadd.xlane.f32.xlu0 %v1357_v32  ;;  %v731_v38 = vadd.f32 %v722_v34, %v721_v24 }
 0x109   : > { %v866_v39 = vadd.f32 %v826_v29, %v824_v18  ;;  %v723_v40 = vmul.f32 %v668_v17, %v668_v17  ;;  %1108 = vst [vmem:[%s1329_s28 + $0x58] sm:$0xff] %v1145_v25  ;;  %v724_v41 = vmul.f32 %v670_v23, %v670_v23  ;;  %v879_v42 = vmul.f32 %v824_v18, %v824_v18 }
 0x10a   : > { %1128 = vst [vmem:[%s1329_s28 + $0x78] sm:$0xff] %v1149_v36  ;;  %v887_v54 = vadd.f32 %v878_v37, %v877_v35  ;;  %v880_v43 = vmul.f32 %v826_v29, %v826_v29 }
 0x10b   : > { %v734_v45 = vadd.f32 %v724_v41, %v723_v40 }
 0x10c   : > { %v890_v46 = vadd.f32 %v880_v43, %v879_v42  ;;  %702 = vadd.xlane.f32.xlu1 %v1373_v53  ;;  %423 = vadd.xlane.f32.xlu0 %v1365_v44 }
 0x110   : > { %858 = vadd.xlane.f32.xlu1 %v1375_v55  ;;  %579 = vadd.xlane.f32.xlu0 %v1369_v49 }
 0x114   : > { %726 = vadd.xlane.f32.xlu1 %v725_v62  ;;  %705 = vadd.xlane.f32.xlu0 %v1379_v60 }
 0x118   : > { %882 = vadd.xlane.f32.xlu1 %v881_v10  ;;  %861 = vadd.xlane.f32.xlu0 %v860_v22 }
 0x11c   : > { %708 = vadd.xlane.f32.xlu1 %v707_v31  ;;  %729 = vadd.xlane.f32.xlu0 %v728_v15 }
 0x120   : > { %864 = vadd.xlane.f32.xlu1 %v863_v33  ;;  %885 = vadd.xlane.f32.xlu0 %v884_v16 }
 0x124   : > { %732 = vadd.xlane.f32.xlu1 %v731_v38  ;;  %711 = vadd.xlane.f32.xlu0 %v710_v27 }
 0x128   : > { %888 = vadd.xlane.f32.xlu1 %v887_v54  ;;  %867 = vadd.xlane.f32.xlu0 %v866_v39 }
 0x12c   : > { %735 = vadd.xlane.f32.xlu0 %v734_v45 }
 0x130   : > { %891 = vadd.xlane.f32.xlu0 %v890_v46 }
 0x17d   : > { %v547_v30 = vpop.xlane.xlu1 %546  ;;  %v391_v32 = vpop.xlane.xlu0 %390 }
 0x17e   : > { %v557_v22 = vadd.f32 %v547_v30, %v391_v32 }
 0x181   : > { %v394_v44 = vpop.xlane.xlu1 %393  ;;  %v550_v47 = vpop.xlane.xlu0 %549 }
 0x182   : > { %v558_v10 = vadd.f32 %v550_v47, %v394_v44 }
 0x185   : > { %v415_v48 = vpop.xlane.xlu1 %414  ;;  %v418_v49 = vpop.xlane.xlu0 %417 }
 0x189   : > { %v571_v50 = vpop.xlane.xlu1 %570  ;;  %v574_v51 = vpop.xlane.xlu0 %573 }
 0x18a   : > { %v581_v0 = vadd.f32 %v571_v50, %v415_v48  ;;  %v582_v11 = vadd.f32 %v574_v51, %v418_v49 }
 0x18d   : > { %v553_v21 = vpop.xlane.xlu1 %552  ;;  %v397_v52 = vpop.xlane.xlu0 %396 }
 0x18e   : > { %v559_v24 = vadd.f32 %v553_v21, %v397_v52 }
 0x191   : > { %v421_v53 = vpop.xlane.xlu1 %420  ;;  %v400_v55 = vpop.xlane.xlu0 %399 }
 0x195   : > { %v577_v56 = vpop.xlane.xlu1 %576  ;;  %v556_v57 = vpop.xlane.xlu0 %555 }
 0x196   : > { %v583_v26 = vadd.f32 %v577_v56, %v421_v53  ;;  %v560_v36 = vadd.f32 %v556_v57, %v400_v55 }
 0x199   : > { %v703_v58 = vpop.xlane.xlu1 %702  ;;  %v424_v59 = vpop.xlane.xlu0 %423 }
 0x19a   : > { %v713_v1 = vadd.f32 %v703_v58, %v557_v22 }
 0x19d   : > { %v859_v60 = vpop.xlane.xlu1 %858  ;;  %v580_v61 = vpop.xlane.xlu0 %579 }
 0x19e   : > { %v869_v5 = vadd.f32 %v859_v60, %v713_v1  ;;  %v584_v27 = vadd.f32 %v580_v61, %v424_v59 }
 0x1a1   : > { %v727_v62 = vpop.xlane.xlu1 %726  ;;  %v706_v63 = vpop.xlane.xlu0 %705 }
 0x1a2   : > { %v737_v2 = vadd.f32 %v727_v62, %v581_v0  ;;  %v714_v12 = vadd.f32 %v706_v63, %v558_v10 }
 0x1a5   : > { %v883_v3 = vpop.xlane.xlu1 %882  ;;  %v862_v4 = vpop.xlane.xlu0 %861 }
 0x1a6   : > { %v893_v6 = vadd.f32 %v883_v3, %v737_v2  ;;  %v870_v16 = vadd.f32 %v862_v4, %v714_v12 }
 0x1a8   : > { %v898_v7 = vsel %vm897_vm1, %v869_v5, %v893_v6 }
 0x1a9   : > { %907 = vst.msk [vmem:[%s1408_s6] sm:$0xff] %vm906_vm2, %v898_v7  ;;  %v709_v8 = vpop.xlane.xlu1 %708  ;;  %v730_v9 = vpop.xlane.xlu0 %729 }
 0x1aa   : > { %v738_v13 = vadd.f32 %v730_v9, %v582_v11  ;;  %v715_v28 = vadd.f32 %v709_v8, %v559_v24 }
 0x1ad   : > { %v865_v14 = vpop.xlane.xlu1 %864  ;;  %v886_v15 = vpop.xlane.xlu0 %885 }
 0x1ae   : > { %v894_v17 = vadd.f32 %v886_v15, %v738_v13  ;;  %v871_v33 = vadd.f32 %v865_v14, %v715_v28 }
 0x1b0   : > { %v899_v18 = vsel %vm897_vm1, %v870_v16, %v894_v17 }
 0x1b1   : > { %908 = vst.msk [vmem:[%s1408_s6 + $0x8] sm:$0xff] %vm906_vm2, %v899_v18  ;;  %v733_v19 = vpop.xlane.xlu1 %732  ;;  %v712_v20 = vpop.xlane.xlu0 %711 }
 0x1b2   : > { %v739_v23 = vadd.f32 %v733_v19, %v583_v26  ;;  %v716_v37 = vadd.f32 %v712_v20, %v560_v36 }
 0x1b5   : > { %v889_v29 = vpop.xlane.xlu1 %888  ;;  %v868_v31 = vpop.xlane.xlu0 %867 }
 0x1b6   : > { %v895_v34 = vadd.f32 %v889_v29, %v739_v23  ;;  %v872_v40 = vadd.f32 %v868_v31, %v716_v37 }
 0x1b8   : > { %v900_v35 = vsel %vm897_vm1, %v871_v33, %v895_v34 }
 0x1b9   : > { %909 = vst.msk [vmem:[%s1408_s6 + $0x10] sm:$0xff] %vm906_vm2, %v900_v35  ;;  %v736_v25 = vpop.xlane.xlu0 %735 }
 0x1ba   : > { %v740_v38 = vadd.f32 %v736_v25, %v584_v27 }
 0x1bd   : > { %v892_v39 = vpop.xlane.xlu0 %891 }
 0x1be   : > { %v896_v54 = vadd.f32 %v892_v39, %v740_v38 }
 0x1c0   : > { %v901_v41 = vsel %vm897_vm1, %v872_v40, %v896_v54 }
 0x1c1   : > { %910 = vst.msk [vmem:[%s1408_s6 + $0x18] sm:$0xff] %vm906_vm2, %v901_v41 }
 0x1c2 PF: > { %s15_s17 = sadd.s32 1, %s1219_s17   ;;  %s1436_s15 = smov %s1215_s16 }
 0x1c3   : > { %p12_p5 = scmp.ge.s32.totalorder %s15_s17, 4   ;;  %s1437_s16 = smov %s1439_s18 }
 0x1c5   :  { %14 = sbr.rel (!%p12_p5) target bundleno = 2 (0x2), region = 91 }

</bundles_post_ra>
